<compile_context>
chip_gen: v6e
topology: v6e:2x2x1
jax: 0.10.0
libtpu: 0.0.40
codegen_flags: <defaults>
</compile_context>

<pallas_src>
import functools

import jax
import jax.numpy as jnp
from jax import lax
from jax.experimental import pallas as pl
from jax.experimental.pallas import tpu as pltpu

NEG_INF = -1e9
VMEM_LIMIT_BYTES = 48 << 20  # <= 64 MiB physical on v7x, well under v5e/v6e


def _is_v7():
    try:
        return "v7" in jax.devices()[0].device_kind.lower()
    except Exception:  # pragma: no cover
        return False


def _row_tile(n):
    # v5e/v6e (128 MiB VMEM): 512-row tiles reach ~85% of HBM roofline.
    # v7x (64 MiB VMEM): keep 256 rows to leave room for double-buffered weights.
    cap = 256 if _is_v7() else 512
    return n if n <= cap else cap


def _cparams(n_parallel):
    return pltpu.CompilerParams(
        dimension_semantics=("parallel",) * n_parallel,
        vmem_limit_bytes=VMEM_LIMIT_BYTES,
    )


# ----------------------------------------------------------------------------
# Kernels
# ----------------------------------------------------------------------------
def _linear_kernel(x_ref, w_ref, b_ref, o_ref):
    # x: (TN, Din) f32, w: (Din, Dout) bf16, b: (1, Dout) f32
    x = x_ref[...].astype(jnp.bfloat16)
    o_ref[...] = (
        jnp.dot(x, w_ref[...], preferred_element_type=jnp.float32) + b_ref[...]
    )


def _ffn_block_kernel(x_ref, w1_ref, b1_ref, w2_ref, b2_ref, g_ref, be_ref,
                      o_ref, *, f_chunk):
    # Fused FFN + residual + LayerNorm; hidden dim tiled in f_chunk columns so
    # the f32 intermediate never materializes as a (tn, F) VMEM spill buffer.
    x = x_ref[...]
    xb = x.astype(jnp.bfloat16)
    F = w1_ref.shape[1]
    y = jnp.zeros(x.shape, jnp.float32)
    for c in range(0, F, f_chunk):
        h = (
            jnp.dot(xb, w1_ref[:, c:c + f_chunk],
                    preferred_element_type=jnp.float32)
            + b1_ref[:, c:c + f_chunk]
        )
        h = jnp.maximum(h, 0.0)
        y = y + jnp.dot(h.astype(jnp.bfloat16), w2_ref[c:c + f_chunk, :],
                        preferred_element_type=jnp.float32)
    y = y + b2_ref[...] + x
    mu = jnp.mean(y, axis=-1, keepdims=True)
    yc = y - mu
    var = jnp.mean(yc * yc, axis=-1, keepdims=True)
    o_ref[...] = yc * lax.rsqrt(var + 1e-5) * g_ref[...] + be_ref[...]


def _attn_block_kernel(*refs, num_heads, scale, has_src, masked):
    # Fused (QKV projection + MHA + out-proj + residual + LayerNorm) for one
    # (batch, query-tile) grid step.
    idx = 0
    x_ref = refs[idx]; idx += 1                      # (TQ, E) query/residual
    src_ref = None
    if has_src:
        src_ref = refs[idx]; idx += 1                # (T, E) key/value source
    mask_ref = None
    if masked:
        mask_ref = refs[idx]; idx += 1               # (1, T), 1 = attend
    (wq_ref, bq_ref, wkv_ref, bkv_ref,
     wo_ref, bo_ref, g_ref, be_ref, o_ref) = refs[idx:]

    E = x_ref.shape[1]
    dh = E // num_heads

    x = x_ref[...]                                   # f32 residual
    xb = x.astype(jnp.bfloat16)
    srcb = src_ref[...].astype(jnp.bfloat16) if has_src else xb

    # Fused QKV projection: two full-K MXU passes; 1/sqrt(dh) folded into q.
    q = (jnp.dot(xb, wq_ref[...], preferred_element_type=jnp.float32)
         + bq_ref[...]) * scale                      # (TQ, E)
    kv = (jnp.dot(srcb, wkv_ref[...], preferred_element_type=jnp.float32)
          + bkv_ref[...])                            # (T, 2E) = [K | V]

    if masked:
        bias = (1.0 - mask_ref[...]) * NEG_INF       # (1, T)

    # TODO(synk): dh-wide (non-128) lane slices below lower to lane selects;
    # acceptable while VPU/XLU slots have slack (softmax/scores dominate them).
    ctx_heads = []
    for hh in range(num_heads):
        lo = hh * dh
        q_h = q[:, lo:lo + dh].astype(jnp.bfloat16)          # (TQ, dh)
        k_h = kv[:, lo:lo + dh].astype(jnp.bfloat16)         # (T, dh)
        v_h = kv[:, E + lo:E + lo + dh].astype(jnp.bfloat16)  # (T, dh)

        s = lax.dot_general(q_h, k_h, (((1,), (1,)), ((), ())),
                            preferred_element_type=jnp.float32)  # (TQ, T)
        if masked:
            s = s + bias
        s = s - jnp.max(s, axis=-1, keepdims=True)
        p = jnp.exp(s)
        p = p * pl.reciprocal(jnp.sum(p, axis=-1, keepdims=True), approx=True)

        ctx_heads.append(
            jnp.dot(p.astype(jnp.bfloat16), v_h,
                    preferred_element_type=jnp.float32).astype(jnp.bfloat16))

    # Single full-width output projection: one (TQ,E) @ (E,E) MXU pass.
    ctx = jnp.concatenate(ctx_heads, axis=-1)        # (TQ, E) bf16
    y = (jnp.dot(ctx, wo_ref[...], preferred_element_type=jnp.float32)
         + bo_ref[...] + x)

    mu = jnp.mean(y, axis=-1, keepdims=True)
    yc = y - mu
    var = jnp.mean(yc * yc, axis=-1, keepdims=True)
    o_ref[...] = yc * lax.rsqrt(var + 1e-5) * g_ref[...] + be_ref[...]


# ----------------------------------------------------------------------------
# pallas_call wrappers
# ----------------------------------------------------------------------------
def linear(x, w_bf16, b):
    """x (..., Din) @ w (Din, Dout) + b, row-tiled over the flattened batch."""
    lead = x.shape[:-1]
    din = x.shape[-1]
    dout = w_bf16.shape[1]
    x2 = x.reshape(-1, din)
    n = x2.shape[0]
    tn = _row_tile(n)
    out = pl.pallas_call(
        _linear_kernel,
        out_shape=jax.ShapeDtypeStruct((n, dout), jnp.float32),
        grid=(pl.cdiv(n, tn),),
        in_specs=[
            pl.BlockSpec((tn, din), lambda i: (i, 0)),
            pl.BlockSpec((din, dout), lambda i: (0, 0)),
            pl.BlockSpec((1, dout), lambda i: (0, 0)),
        ],
        out_specs=pl.BlockSpec((tn, dout), lambda i: (i, 0)),
        compiler_params=_cparams(1),
    )(x2, w_bf16, b.reshape(1, dout))
    return out.reshape(*lead, dout)


def attn_block(x, src, mask3, p, gamma, beta, num_heads):
    """Fused (QKV proj + MHA + out-proj + residual + LayerNorm) block.

    x:    (B, S, E) query/residual input.
    src:  (B, T, E) key/value input, or None for self-attention.
    mask3: optional (B, 1, T) key-padding mask (1 = attend).
    """
    B, S, E = x.shape
    cross = src is not None
    T = src.shape[1] if cross else S
    masked = mask3 is not None
    dh = E // num_heads
    scale = 1.0 / (dh ** 0.5)

    # Query-row tiling (v7x: more grid steps -> cross-core sharding + pipeline).
    tq = S if S <= 512 else 512
    nq = pl.cdiv(S, tq)
    # Self-attention with query tiling needs the full-sequence K/V source too.
    has_src = cross or (nq > 1)

    kernel = functools.partial(
        _attn_block_kernel, num_heads=num_heads, scale=scale,
        has_src=has_src, masked=masked)

    in_specs = [pl.BlockSpec((None, tq, E), lambda b, qi: (b, qi, 0))]
    args = [x]
    if has_src:
        in_specs.append(pl.BlockSpec((None, T, E), lambda b, qi: (b, 0, 0)))
        args.append(src if cross else x)
    if masked:
        in_specs.append(pl.BlockSpec((None, 1, T), lambda b, qi: (b, 0, 0)))
        args.append(mask3)

    def wspec(shape):
        return pl.BlockSpec(shape, lambda b, qi: (0, 0))

    in_specs += [
        wspec((E, E)), wspec((1, E)),            # wq, bq
        wspec((E, 2 * E)), wspec((1, 2 * E)),    # wkv, bkv
        wspec((E, E)), wspec((1, E)),            # wo, bo
        wspec((1, E)), wspec((1, E)),            # gamma, beta
    ]
    args += [
        p["wq"], p["bq"].reshape(1, E),
        p["wkv"], p["bkv"].reshape(1, 2 * E),
        p["wo"], p["bo"].reshape(1, E),
        gamma.reshape(1, E), beta.reshape(1, E),
    ]

    return pl.pallas_call(
        kernel,
        out_shape=jax.ShapeDtypeStruct((B, S, E), jnp.float32),
        grid=(B, nq),
        in_specs=in_specs,
        out_specs=pl.BlockSpec((None, tq, E), lambda b, qi: (b, qi, 0)),
        compiler_params=_cparams(2),
    )(*args)


def ffn_block(x, p, gamma, beta):
    """FFN + residual + LayerNorm, row-tiled over the flattened batch."""
    lead = x.shape[:-1]
    e = x.shape[-1]
    f = p["w1"].shape[1]
    f_chunk = 512 if (f > 512 and f % 512 == 0) else f
    x2 = x.reshape(-1, e)
    n = x2.shape[0]
    tn = _row_tile(n)
    out = pl.pallas_call(
        functools.partial(_ffn_block_kernel, f_chunk=f_chunk),
        out_shape=jax.ShapeDtypeStruct((n, e), jnp.float32),
        grid=(pl.cdiv(n, tn),),
        in_specs=[
            pl.BlockSpec((tn, e), lambda i: (i, 0)),
            pl.BlockSpec((e, f), lambda i: (0, 0)),
            pl.BlockSpec((1, f), lambda i: (0, 0)),
            pl.BlockSpec((f, e), lambda i: (0, 0)),
            pl.BlockSpec((1, e), lambda i: (0, 0)),
            pl.BlockSpec((1, e), lambda i: (0, 0)),
            pl.BlockSpec((1, e), lambda i: (0, 0)),
        ],
        out_specs=pl.BlockSpec((tn, e), lambda i: (i, 0)),
        compiler_params=_cparams(1),
    )(x2, p["w1"], p["b1"].reshape(1, f), p["w2"], p["b2"].reshape(1, e),
      gamma.reshape(1, e), beta.reshape(1, e))
    return out.reshape(*lead, e)


# ----------------------------------------------------------------------------
# Transformer blocks (post-LN, ReLU FFN)
# ----------------------------------------------------------------------------
def encoder_block(x, mask3, p, heads):
    x = attn_block(x, None, mask3, p["attn"], p["ln1_g"], p["ln1_b"], heads)
    x = ffn_block(x, p["ff"], p["ln2_g"], p["ln2_b"])
    return x


def decoder_block(y, enc, p, heads):
    # TODO(synk): reference TransfermerDecoder is called as decoder(tokens, x)
    # with no masks, so self-attention is non-causal and cross-attention is
    # unmasked here (matching the forward call signature).
    y = attn_block(y, None, None, p["self_attn"], p["ln1_g"], p["ln1_b"], heads)
    y = attn_block(y, enc, None, p["cross_attn"], p["ln2_g"], p["ln2_b"], heads)
    y = ffn_block(y, p["ff"], p["ln3_g"], p["ln3_b"])
    return y


def transferable_transformer_plus(params, x, d, h, mask, heads):
    """Mirror of the PyTorch forward:
       tokens = Linear(x); x_enc = Encoder(tokens, mask)
       tokens = Linear(d); tokens = cat((tokens, h), dim=1)
       return Decoder(tokens, x_enc)
    """
    B, Sx, _ = x.shape
    tokens_x = linear(x, params["tok_w"], params["tok_b"])

    # tiny (B, 1, Sx) key-padding mask; additive bias built inside the kernel.
    mask3 = mask.astype(jnp.float32).reshape(B, 1, Sx)

    enc = tokens_x
    for lp in params["encoder"]:
        enc = encoder_block(enc, mask3, lp, heads)

    tokens_d = linear(d, params["tok_w"], params["tok_b"])
    dec_tokens = jnp.concatenate([tokens_d, h], axis=1)  # cat along seq (dim=1)

    y = dec_tokens
    for lp in params["decoder"]:
        y = decoder_block(y, enc, lp, heads)
    return y


# ----------------------------------------------------------------------------
# Deterministic parameter construction (matmul weights stored bf16)
# ----------------------------------------------------------------------------
def _dense(key, din, dout):
    w = (0.02 * jax.random.normal(key, (din, dout), jnp.float32)).astype(jnp.bfloat16)
    return w, jnp.zeros((dout,), jnp.float32)


def _attn_params(key, emb):
    kq, kk, kv, ko = jax.random.split(key, 4)
    wq, bq = _dense(kq, emb, emb)
    wk, bk = _dense(kk, emb, emb)
    wv, bv = _dense(kv, emb, emb)
    wo, bo = _dense(ko, emb, emb)
    return dict(
        wq=wq, bq=bq,
        wkv=jnp.concatenate([wk, wv], axis=1),        # (E, 2E) bf16
        bkv=jnp.concatenate([bk, bv], axis=0),        # (2E,)   f32
        wo=wo, bo=bo,
    )


def _ffn_params(key, emb, ff):
    k1, k2 = jax.random.split(key)
    w1, b1 = _dense(k1, emb, ff)
    w2, b2 = _dense(k2, ff, emb)
    return dict(w1=w1, b1=b1, w2=w2, b2=b2)


def make_params(key, input_dim, emb, ff, enc_depth, dec_depth):
    keys = jax.random.split(key, 1 + enc_depth + dec_depth)
    tok_w, tok_b = _dense(keys[0], input_dim, emb)
    enc_layers = []
    for i in range(enc_depth):
        k1, k2 = jax.random.split(keys[1 + i])
        enc_layers.append(dict(
            attn=_attn_params(k1, emb),
            ff=_ffn_params(k2, emb, ff),
            ln1_g=jnp.ones((emb,), jnp.float32), ln1_b=jnp.zeros((emb,), jnp.float32),
            ln2_g=jnp.ones((emb,), jnp.float32), ln2_b=jnp.zeros((emb,), jnp.float32),
        ))
    dec_layers = []
    for i in range(dec_depth):
        k1, k2, k3 = jax.random.split(keys[1 + enc_depth + i], 3)
        dec_layers.append(dict(
            self_attn=_attn_params(k1, emb),
            cross_attn=_attn_params(k2, emb),
            ff=_ffn_params(k3, emb, ff),
            ln1_g=jnp.ones((emb,), jnp.float32), ln1_b=jnp.zeros((emb,), jnp.float32),
            ln2_g=jnp.ones((emb,), jnp.float32), ln2_b=jnp.zeros((emb,), jnp.float32),
            ln3_g=jnp.ones((emb,), jnp.float32), ln3_b=jnp.zeros((emb,), jnp.float32),
        ))
    return dict(tok_w=tok_w, tok_b=tok_b, encoder=enc_layers, decoder=dec_layers)


# ----------------------------------------------------------------------------
if __name__ == "__main__":
    # small, lane-dense shapes (emb multiple of 128)
    B, Sx, Sd, Sh = 2, 16, 8, 8
    input_dim, emb, heads, ff = 32, 128, 4, 256
    enc_depth, dec_depth = 1, 1

    root = jax.random.PRNGKey(0)
    kp, kx, kd, kh = jax.random.split(root, 4)

    params = make_params(kp, input_dim, emb, ff, enc_depth, dec_depth)

    x = jax.random.normal(kx, (B, Sx, input_dim), jnp.float32)   # encoder input
    d = jax.random.normal(kd, (B, Sd, input_dim), jnp.float32)   # decoder raw input
    h = jax.random.normal(kh, (B, Sh, emb), jnp.float32)         # extra decoder tokens
    mask = jnp.ones((B, Sx), jnp.float32)                        # 1 = attend

    out = transferable_transformer_plus(params, x, d, h, mask, heads)
    out = jax.block_until_ready(out)

    assert out.shape == (B, Sd + Sh, emb), out.shape
    assert jnp.all(jnp.isfinite(out))
    print("KERNEL_OK")
</pallas_src>

<mosaic_0001>
module attributes {stable_mosaic.version = 11 : i64} {
  func.func @_linear_kernel(%arg0: i32, %arg1: memref<32x32xf32, #tpu.memory_space<vmem>>, %arg2: memref<32x128xbf16, #tpu.memory_space<vmem>>, %arg3: memref<1x128xf32, #tpu.memory_space<vmem>>, %arg4: memref<32x128xf32, #tpu.memory_space<vmem>>) attributes {dimension_semantics = [#tpu.dimension_semantics<parallel>], iteration_bounds = array<i64: 1>, scalar_prefetch = 0 : i64, scratch_operands = 0 : i64, tpu.core_type = #tpu.core_type<tc>, window_params = [{transform_indices = @transform_0, window_bounds = array<i64: 32, 32>}, {pipeline_mode = #tpu.pipeline_mode<synchronous>, transform_indices = @transform_1, window_bounds = array<i64: 32, 128>}, {pipeline_mode = #tpu.pipeline_mode<synchronous>, transform_indices = @transform_2, window_bounds = array<i64: 1, 128>}, {transform_indices = @transform_3, window_bounds = array<i64: 32, 128>}]} {
    %c0 = arith.constant 0 : index
    %c0_0 = arith.constant 0 : index
    %0 = vector.load %arg1[%c0, %c0_0] : memref<32x32xf32, #tpu.memory_space<vmem>>, vector<32x32xf32>
    %1 = arith.truncf %0 : vector<32x32xf32> to vector<32x32xbf16>
    %c0_1 = arith.constant 0 : index
    %c0_2 = arith.constant 0 : index
    %2 = vector.load %arg2[%c0_1, %c0_2] : memref<32x128xbf16, #tpu.memory_space<vmem>>, vector<32x128xbf16>
    %cst = arith.constant dense<0.000000e+00> : vector<32x128xf32>
    %3 = tpu.matmul %1, %2, %cst {dimension_numbers = #tpu.dot_dimension_numbers<[1], [0], [0], [1], [0, 0, 1, 1], [], []>} : vector<32x32xbf16>, vector<32x128xbf16>, vector<32x128xf32> -> vector<32x128xf32>
    %c0_3 = arith.constant 0 : index
    %c0_4 = arith.constant 0 : index
    %4 = vector.load %arg3[%c0_3, %c0_4] : memref<1x128xf32, #tpu.memory_space<vmem>>, vector<1x128xf32>
    %5 = vector.broadcast %4 : vector<1x128xf32> to vector<32x128xf32>
    %6 = arith.addf %3, %5 : vector<32x128xf32>
    %c0_5 = arith.constant 0 : index
    %c0_6 = arith.constant 0 : index
    %7 = vector.load %arg4[%c0_5, %c0_6] : memref<32x128xf32, #tpu.memory_space<vmem>>, vector<32x128xf32>
    tpu.vector_store %arg4[%c0_5, %c0_6], %6 {strides = array<i32>} : memref<32x128xf32, #tpu.memory_space<vmem>>, vector<32x128xf32>,
    return
  }
  func.func @transform_0(%arg0: i32) -> (i32, i32) {
    %c0_i32 = arith.constant 0 : i32
    %c0_i32_0 = arith.constant 0 : i32
    return %arg0, %c0_i32 : i32, i32
  }
  func.func @transform_1(%arg0: i32) -> (i32, i32) {
    %c0_i32 = arith.constant 0 : i32
    %c0_i32_0 = arith.constant 0 : i32
    %c0_i32_1 = arith.constant 0 : i32
    return %c0_i32, %c0_i32_0 : i32, i32
  }
  func.func @transform_2(%arg0: i32) -> (i32, i32) {
    %c0_i32 = arith.constant 0 : i32
    %c0_i32_0 = arith.constant 0 : i32
    %c0_i32_1 = arith.constant 0 : i32
    return %c0_i32, %c0_i32_0 : i32, i32
  }
  func.func @transform_3(%arg0: i32) -> (i32, i32) {
    %c0_i32 = arith.constant 0 : i32
    %c0_i32_0 = arith.constant 0 : i32
    return %arg0, %c0_i32 : i32, i32
  }
}

</mosaic_0001>

<bundles_post_ra>
// kernel: tpu_custom_call.1
= control target key start
LH: loop header
LB: loop body
LE: loop exit
PB: predicated region body
PF: predicated region fallthrough
CT: control target
= control target key end

     0   :  { %8 = vsyncpa [#allocation3], 0  ;;  %s288_s0 = inlined_call_operand.hbm [shape: f32[32,32], index: 0, kind: input, shape index: {}]   ;;  %s289_s1 = inlined_call_operand.hbm [shape: bf16[32,128], index: 1, kind: input, shape index: {}]   ;;  %s290_s2 = inlined_call_operand.vmem [shape: f32[1,128], index: 2, kind: input, shape index: {}]   ;;  %s291_s3 = inlined_call_operand.hbm [shape: f32[32,128], index: 3, kind: output, shape index: {}]  }
   0x1   :  { %9 = vsyncpa [#allocation6], 0 }
   0x2   :  { %10 = vsyncpa [#allocation4], 0  ;;  %s243_s12 = smov [#allocation2]  }
   0x3   :  { %s16_s13 = sshll.u32 %s243_s12, 4  ;;  %s17_s13 = int_to_ptr.vmem [resolvable:$true] %s16_s13 }
   0x4   :  { %s185_s14 = scalar_lea.vmem %s17_s13, 512  ;;  %p190_p1 = scmp.lt.s32.totalorder %s17_s13, %s17_s13 }
   0x5   :  { %p186_p0 = scmp.ne.s32.totalorder %s17_s13, %s185_s14  ;;  %p191_p2 = scmp.lt.s32.totalorder %s185_s14, %s185_s14 }
   0x7   :  { %p192_p3 = por %p191_p2, %p190_p1 }
   0x9   :  { %p193_p4 = pnand %p192_p3, %p186_p0 }
   0xb   :  { %196 = shalt.err (!%p193_p4)
}
   0xc   :  { %s244_s15 = smov 128   ;;  %s245_s16 = smov 8  }
   0xd   :  { %22 = dma.hbm_to_vmem [thread:$0]  %s288_s0, 512, %s17_s13, [#allocation3], %s244_s15, %s244_s15, %s245_s16  }
   0xe   :  { %s246_s19 = smov [#allocation5]  }
   0xf   :  { %s28_s20 = sshll.u32 %s246_s19, 4  ;;  %s29_s20 = int_to_ptr.vmem [resolvable:$true] %s28_s20 }
  0x10   :  { %s205_s21 = scalar_lea.vmem %s29_s20, 256  ;;  %p210_p6 = scmp.lt.s32.totalorder %s29_s20, %s29_s20 }
  0x11   :  { %p206_p5 = scmp.ne.s32.totalorder %s29_s20, %s205_s21  ;;  %p211_p7 = scmp.lt.s32.totalorder %s205_s21, %s205_s21 }
  0x13   :  { %p212_p8 = por %p211_p7, %p210_p6 }
  0x15   :  { %p213_p9 = pnand %p212_p8, %p206_p5 }
  0x17   :  { %216 = shalt.err (!%p213_p9)
}
  0x18   :  { %s247_s22 = smov 64   ;;  %s248_s23 = smov 4  }
  0x19   :  { %34 = dma.hbm_to_vmem [thread:$0]  %s289_s1, 256, %s29_s20, [#allocation6], %s247_s22, %s247_s22, %s248_s23  }
  0x1a   :  { %237 = dma.done.wait [#allocation3], 512  }
  0x1b   :  { %238 = vsyncadd [#allocation3], 4294966784 }
  0x1c   :  { %239 = dma.done.wait [#allocation6], 256  }
  0x1d   :  { %240 = vsyncadd [#allocation6], 4294967040  ;;  %v175_v0 = vld [vmem:[#allocation5 + $0x8] sm:$0xff]   ;;  %v176_v1 = vld [vmem:[#allocation5] sm:$0xff]   ;;  %vm73_vm0 = vcmask 261120   ;;  %s249_s26 = smov [#allocation7]  }
  0x1e   :  { %160 = vmatprep.subr.bf16.mxu0 %v175_v0  ;;  %v44_v2 = vld [vmem:[#allocation2] sm:$0xff]  ;;  %v45_v3 = vld [vmem:[#allocation2 + $0x8] sm:$0xff]  ;;  %v46_v5 = vld [vmem:[#allocation2 + $0x10] sm:$0xff]  ;;  %s138_s27 = sshll.u32 %s249_s26, 4  ;;  %s139_s27 = int_to_ptr.vmem [resolvable:$true] %s138_s27 }
  0x1f   :  { %161 = vmatpush3.bf16.msra.mxu0 %v175_v0  ;;  %v48_v4 = vpack.c.bf16 %v45_v3, %v44_v2  ;;  %v47_v6 = vld [vmem:[#allocation2 + $0x18] sm:$0xff]  ;;  %v151_v8 = vld [vmem:[%s290_s2] ss:$0 sm:$0xff]  ;;  %s217_s28 = scalar_lea.vmem %s139_s27, 512  ;;  %p222_p11 = scmp.lt.s32.totalorder %s139_s27, %s139_s27 }
  0x20   :  { %162 = vmatprep.subr.bf16.mxu0 %v176_v1  ;;  %v49_v7 = vpack.c.bf16 %v47_v6, %v46_v5  ;;  %p218_p10 = scmp.ne.s32.totalorder %s139_s27, %s217_s28  ;;  %p223_p12 = scmp.lt.s32.totalorder %s217_s28, %s217_s28 }
  0x21   :  { %164 = vmatprep.mubr.msk.bf16.mxu0 %vm73_vm0, %v48_v4 }
  0x22   :  { %p224_p13 = por %p223_p12, %p222_p11 }
  0x23   :  { %163 = vmatpush3.bf16.msra.mxu0 %v176_v1 }
  0x24   :  { %p225_p0 = pnand %p224_p13, %p218_p10 }
  0x26   :  { %165 = vmatmul.mubr.msk.bf16.vlgmr.msra.gmra.mxu0 %vm73_vm0, %v49_v7 }
  0xe6   :  { %v166_v9 = vpop.f32.mrf.mxu0 }
  0xe7   :  { %v123_v10 = vadd.f32 %v166_v9, %v151_v8 }
  0xe8   :  { %v114_v11 = vpop.f32.mrf.mxu0 }
  0xe9   :  { %131 = vst [vmem:[#allocation7 + $0x10] sm:$0xff] %v123_v10  ;;  %v115_v12 = vadd.f32 %v151_v8, %v114_v11 }
  0xea   :  { %v167_v13 = vpop.f32.mrf.mxu0 }
  0xeb   :  { %129 = vst [vmem:[#allocation7] sm:$0xff] %v115_v12  ;;  %v126_v14 = vadd.f32 %v167_v13, %v151_v8 }
  0xec   :  { %v117_v15 = vpop.f32.mrf.mxu0 }
  0xed   :  { %132 = vst [vmem:[#allocation7 + $0x18] sm:$0xff] %v126_v14  ;;  %v118_v16 = vadd.f32 %v151_v8, %v117_v15 }
  0xef   :  { %130 = vst [vmem:[#allocation7 + $0x8] sm:$0xff] %v118_v16 }
  0xf0   :  { %228 = shalt.err (!%p225_p0)
}
  0xf1   :  { %144 = dma.vmem_to_hbm [thread:$0]  %s139_s27, 512, %s291_s3, [#allocation4], %s244_s15, %s244_s15, %s245_s16  }
  0xf2   :  { %241 = dma.done.wait [#allocation4], 512  }
  0xf3   :  { %242 = vsyncadd [#allocation4], 4294966784 }
  0xf4   :  { %148 = vsyncpa [#allocation3], 1 }
  0xf5   :  { %149 = vsyncpa [#allocation6], 1 }
  0xf6   :  { %150 = vsyncpa [#allocation4], 1 }

</bundles_post_ra>
